<compile_context>
chip_gen: v7x
topology: tpu7x:2x2x1
jax: 0.10.0
libtpu: 0.0.40
codegen_flags: <defaults>
</compile_context>

<pallas_src>
import math

import jax
import jax.numpy as jnp
from jax.experimental import pallas as pl
from jax.experimental.pallas import tpu as pltpu


def _linear_kernel(x_ref, w_ref, b_ref, o_ref):
    # x_ref: [tm, K]  w_ref: [K, dout]  b_ref: [1, dout]  o_ref: [tm, dout]
    acc = jnp.dot(x_ref[...], w_ref[...], preferred_element_type=jnp.float32)
    # Bias add on the f32 accumulator; single cast at the store.
    o_ref[...] = (acc + b_ref[...].astype(jnp.float32)).astype(o_ref.dtype)


def _round_up(a, b):
    return -(-a // b) * b


def _sublane_pack(dtype):
    # Second-to-last block-dim granularity: 8 for f32, 16 for bf16/f16,
    # 32 for int8/fp8 (sub-32-bit dtypes pack along sublanes).
    return max(8, 32 // jnp.dtype(dtype).itemsize)


def q_net_forward(x, w, b, *, tm_max=8192, compute_dtype=None):
    """q = x @ w + b.

    Args:
      x: [..., hidden_dim] activations.
      w: [hidden_dim, dout] — PyTorch nn.Linear weight pre-transposed
         (i.e. ``torch_linear.weight.T``).  Orientation is asserted against
         x's last dim; NB if hidden_dim == dout a wrong orientation still
         passes the shape check, so transpose explicitly at the call site.
      b: [dout] bias.
      tm_max: max rows per grid step (large so per-step DMA >> step overhead).
      compute_dtype: optional narrower dtype (e.g. jnp.bfloat16 on v6e/v7x)
        for the x/w streams; accumulation and bias add stay f32 and the
        output keeps x.dtype.
    """
    *lead, k = x.shape
    assert w.ndim == 2 and w.shape[0] == k, (
        f"w must be [hidden_dim={k}, dout], got {w.shape} "
        "(pass torch_linear.weight.T)")
    dout = w.shape[1]
    assert b.shape == (dout,), f"b must be [dout={dout}], got {b.shape}"

    m = math.prod(lead) if lead else 1
    out_dtype = x.dtype

    x2d = x.reshape(m, k)
    if compute_dtype is not None:
        x2d = x2d.astype(compute_dtype)
        w = w.astype(compute_dtype)
    b2d = b.reshape(1, dout)

    # Row tile: dtype-aware sublane rounding.  The ragged last block (when tm
    # does not divide M) is handled by Pallas's masked boundary load/store.
    sub = _sublane_pack(x2d.dtype)
    tm_max = _round_up(max(int(tm_max), sub), sub)
    if m <= tm_max:
        tm = m          # single full-extent block (always a legal block shape)
    else:
        tm = tm_max     # multiple of the sublane pack; last block may be ragged
    grid = (pl.cdiv(m, tm),)

    cost = pl.CostEstimate(
        flops=2 * m * k * dout,
        transcendentals=0,
        bytes_accessed=(m * k * jnp.dtype(x2d.dtype).itemsize
                        + k * dout * jnp.dtype(w.dtype).itemsize
                        + dout * jnp.dtype(b.dtype).itemsize
                        + m * dout * jnp.dtype(out_dtype).itemsize),
    )

    out = pl.pallas_call(
        _linear_kernel,
        out_shape=jax.ShapeDtypeStruct((m, dout), out_dtype),
        grid=grid,
        in_specs=[
            # x: tiled over M, double-buffered by the BlockSpec pipeline.
            pl.BlockSpec((tm, k), lambda i: (i, 0)),
            # w / b: constant index_map -> fetched once, resident across the
            # grid.  (pl.Buffered(1) would trim their idle double buffers, but
            # the win is negligible at these sizes.)
            pl.BlockSpec((k, dout), lambda i: (0, 0)),
            pl.BlockSpec((1, dout), lambda i: (0, 0)),
        ],
        out_specs=pl.BlockSpec((tm, dout), lambda i: (i, 0)),
        compiler_params=pltpu.CompilerParams(
            # M-tiles are independent.  With DGN-sized inputs grid=(1,) and
            # nothing shards; this only matters for large-M batches where each
            # v7x core gets at least one full (>=4096-row) tile.
            dimension_semantics=("parallel",),
        ),
        cost_estimate=cost,
    )(x2d, w, b2d)

    return out.reshape(*lead, dout)


if __name__ == "__main__":
    # Shapes implied by Q_Net(hidden_dim, dout) in DGN: x = [batch, n_agents, hidden_dim]
    batch, n_agents, hidden_dim, dout = 2, 8, 32, 16

    key = jax.random.PRNGKey(0)
    kx, kw, kb, kx2 = jax.random.split(key, 4)

    x = jax.random.normal(kx, (batch, n_agents, hidden_dim), dtype=jnp.float32)

    # Deterministic init matching nn.Linear's U(-1/sqrt(fan_in), 1/sqrt(fan_in)).
    # PyTorch stores weight as [dout, hidden_dim]; we keep it pre-transposed.
    bound = 1.0 / (hidden_dim ** 0.5)
    w = jax.random.uniform(kw, (hidden_dim, dout), minval=-bound, maxval=bound,
                           dtype=jnp.float32)
    b = jax.random.uniform(kb, (dout,), minval=-bound, maxval=bound,
                           dtype=jnp.float32)

    q_ref = x @ w + b

    # Single-tile path (M=16 fits in one tile, grid=(1,)).
    q = q_net_forward(x, w, b)
    jax.block_until_ready(q)
    assert q.shape == (batch, n_agents, dout)
    assert jnp.allclose(q, q_ref, atol=1e-5, rtol=1e-5)

    # Multi-tile + ragged-last-block path: M = 2*9 = 18 rows, tm=8 -> grid=(3,),
    # last block has only 2 valid rows (exercises the masked boundary store
    # that replaced the old pad/slice HBM copies).
    x_rag = jax.random.normal(kx2, (batch, 9, hidden_dim), dtype=jnp.float32)
    q_rag_ref = x_rag @ w + b
    q_rag = q_net_forward(x_rag, w, b, tm_max=8)
    jax.block_until_ready(q_rag)
    assert q_rag.shape == (batch, 9, dout)
    assert jnp.allclose(q_rag, q_rag_ref, atol=1e-5, rtol=1e-5)

    # Optional bf16-input path (v6e/v7x mem-bound regime); f32 accumulate and
    # f32 bias add inside the kernel, output stays f32.
    q_bf16 = q_net_forward(x, w, b, compute_dtype=jnp.bfloat16)
    jax.block_until_ready(q_bf16)
    assert q_bf16.shape == (batch, n_agents, dout)
    assert q_bf16.dtype == x.dtype
    assert jnp.allclose(q_bf16, q_ref, atol=5e-2, rtol=5e-2)

    print("KERNEL_OK")
</pallas_src>

<mosaic_0001>
module attributes {stable_mosaic.version = 11 : i64} {
  func.func @_linear_kernel(%arg0: i32, %arg1: memref<16x32xf32, #tpu.memory_space<vmem>>, %arg2: memref<32x16xf32, #tpu.memory_space<vmem>>, %arg3: memref<1x16xf32, #tpu.memory_space<vmem>>, %arg4: memref<16x16xf32, #tpu.memory_space<vmem>>) attributes {dimension_semantics = [#tpu.dimension_semantics<parallel>], iteration_bounds = array<i64: 1>, scalar_prefetch = 0 : i64, scratch_operands = 0 : i64, tpu.core_type = #tpu.core_type<tc>, window_params = [{transform_indices = @transform_0, window_bounds = array<i64: 16, 32>}, {pipeline_mode = #tpu.pipeline_mode<synchronous>, transform_indices = @transform_1, window_bounds = array<i64: 32, 16>}, {pipeline_mode = #tpu.pipeline_mode<synchronous>, transform_indices = @transform_2, window_bounds = array<i64: 1, 16>}, {transform_indices = @transform_3, window_bounds = array<i64: 16, 16>}]} {
    %c0 = arith.constant 0 : index
    %c0_0 = arith.constant 0 : index
    %0 = vector.load %arg1[%c0, %c0_0] : memref<16x32xf32, #tpu.memory_space<vmem>>, vector<16x32xf32>
    %c0_1 = arith.constant 0 : index
    %c0_2 = arith.constant 0 : index
    %1 = vector.load %arg2[%c0_1, %c0_2] : memref<32x16xf32, #tpu.memory_space<vmem>>, vector<32x16xf32>
    %cst = arith.constant dense<0.000000e+00> : vector<16x16xf32>
    %2 = tpu.matmul %0, %1, %cst {dimension_numbers = #tpu.dot_dimension_numbers<[1], [0], [0], [1], [0, 0, 1, 1], [], []>} : vector<16x32xf32>, vector<32x16xf32>, vector<16x16xf32> -> vector<16x16xf32>
    %c0_3 = arith.constant 0 : index
    %c0_4 = arith.constant 0 : index
    %3 = vector.load %arg3[%c0_3, %c0_4] : memref<1x16xf32, #tpu.memory_space<vmem>>, vector<1x16xf32>
    %4 = vector.broadcast %3 : vector<1x16xf32> to vector<16x16xf32>
    %5 = arith.addf %2, %4 : vector<16x16xf32>
    %c0_5 = arith.constant 0 : index
    %c0_6 = arith.constant 0 : index
    %6 = vector.load %arg4[%c0_5, %c0_6] : memref<16x16xf32, #tpu.memory_space<vmem>>, vector<16x16xf32>
    tpu.vector_store %arg4[%c0_5, %c0_6], %5 {strides = array<i32>} : memref<16x16xf32, #tpu.memory_space<vmem>>, vector<16x16xf32>,
    return
  }
  func.func @transform_0(%arg0: i32) -> (i32, i32) {
    %c0_i32 = arith.constant 0 : i32
    %c0_i32_0 = arith.constant 0 : i32
    return %arg0, %c0_i32 : i32, i32
  }
  func.func @transform_1(%arg0: i32) -> (i32, i32) {
    %c0_i32 = arith.constant 0 : i32
    %c0_i32_0 = arith.constant 0 : i32
    %c0_i32_1 = arith.constant 0 : i32
    return %c0_i32, %c0_i32_0 : i32, i32
  }
  func.func @transform_2(%arg0: i32) -> (i32, i32) {
    %c0_i32 = arith.constant 0 : i32
    %c0_i32_0 = arith.constant 0 : i32
    %c0_i32_1 = arith.constant 0 : i32
    return %c0_i32, %c0_i32_0 : i32, i32
  }
  func.func @transform_3(%arg0: i32) -> (i32, i32) {
    %c0_i32 = arith.constant 0 : i32
    %c0_i32_0 = arith.constant 0 : i32
    return %arg0, %c0_i32 : i32, i32
  }
}

</mosaic_0001>

<bundles_post_ra>
// kernel: tpu_custom_call.1
= control target key start
LH: loop header
LB: loop body
LE: loop exit
PB: predicated region body
PF: predicated region fallthrough
CT: control target
= control target key end

     0   :  { %vm28_vm0 = vcmask 261120   ;;  %s240_s0 = inlined_call_operand.vmem [shape: f32[16,32], index: 0, kind: input, shape index: {}]   ;;  %s241_s1 = inlined_call_operand.vmem [shape: f32[32,16], index: 1, kind: input, shape index: {}]   ;;  %s242_s2 = inlined_call_operand.vmem [shape: f32[1,16], index: 2, kind: input, shape index: {}]   ;;  %s243_s3 = inlined_call_operand.hbm [shape: f32[16,16], index: 3, kind: output, shape index: {}]  }
   0x1   :  { %v17_v0 = vld [vmem:[%s241_s1] sm:$0xff]  ;;  %v18_v1 = vld [vmem:[%s241_s1 + $0x8] sm:$0xff]  ;;  %v19_v2 = vld [vmem:[%s241_s1 + $0x10] sm:$0xff] }
   0x2   :  { %v149_v3 = vpack.c.bf16 %v18_v1, %v17_v0  ;;  %v20_v4 = vld [vmem:[%s241_s1 + $0x18] sm:$0xff]  ;;  %v15_v5 = vld [vmem:[%s240_s0] sm:$0xff] }
   0x3   :  { %v153_v6 = vpack.c.bf16 %v20_v4, %v19_v2  ;;  %146 = vmatprep.mubr.msk.f32.mxu0 %vm28_vm0, %v15_v5 }
   0x4   :  { %8 = vsyncpa [#allocation3], 0  ;;  %150 = vmatprep.subr.bf16.mxu0 %v149_v3  ;;  %v16_v7 = vld [vmem:[%s240_s0 + $0x8] sm:$0xff]  ;;  %v129_v8 = vld [vmem:[%s242_s2] ss:$0 sm:$0xff]  ;;  %s184_s1 = smov [#allocation2]  }
   0x5   :  { %152 = vmatpush3.bf16.msra.mxu0 %v149_v3  ;;  %s118_s26 = sshll.u32 %s184_s1, 4  ;;  %vm110_vm1 = vcmask 130048   ;;  %s119_s26 = int_to_ptr.vmem [resolvable:$true] %s118_s26 }
   0x6   :  { %154 = vmatprep.subr.bf16.mxu0 %v153_v6  ;;  %s160_s27 = scalar_lea.vmem %s119_s26, 256  ;;  %p165_p1 = scmp.lt.s32.totalorder %s119_s26, %s119_s26 }
   0x7   :  { %p161_p0 = scmp.ne.s32.totalorder %s119_s26, %s160_s27  ;;  %p166_p2 = scmp.lt.s32.totalorder %s160_s27, %s160_s27 }
   0x9   :  { %156 = vmatpush3.bf16.msra.mxu0 %v153_v6  ;;  %p167_p3 = por %p166_p2, %p165_p1 }
   0xb   :  { %p168_p4 = pnand %p167_p3, %p161_p0 }
   0xc   :  { %147 = vmatmul.mubr.msk.f32.vlgmr.msra.gmra.mrb[0].mxu0 %vm28_vm0, %v16_v7 }
  0xdf   :  { %v148_v9 = vpop.f32.mrb[0].mxu0 }
  0xe0   :  { %v107_v10 = vadd.f32 %v148_v9, %v129_v8  ;;  %v101_v11 = vpop.f32.mrb[1].mxu0 }
  0xe1   :  { %v102_v12 = vadd.f32 %v129_v8, %v101_v11 }
  0xe2   :  { %112 = vst.msk [vmem:[#allocation2 + $0x8] sm:$0xff] %vm110_vm1, %v107_v10 }
  0xe3   :  { %111 = vst.msk [vmem:[#allocation2] sm:$0xff] %vm110_vm1, %v102_v12 }
  0xe4   :  { %171 = shalt.err (!%p168_p4)
}
  0xe5   :  { %s172_s2 = scalar_lea.hbm %s243_s3, 256 }
  0xe6   :  { %p173_p5 = scmp.ne.s32.totalorder %s243_s3, %s172_s2  ;;  %p176_p6 = scmp.lt.u32.totalorder %s172_s2, %s243_s3 }
  0xe8   :  { %p178_p7 = pnand %p176_p6, %p173_p5 }
  0xea   :  { %181 = shalt.err (!%p178_p7)
}
  0xeb   :  { %s185_s6 = smov 128   ;;  %s186_s7 = smov 8  }
  0xec   :  { %124 = dma.vmem_to_hbm [thread:$0]  %s119_s26, 256, %s243_s3, [#allocation3], %s185_s6, %s185_s6, %s186_s7  }
  0xed   :  { %182 = dma.done.wait [#allocation3], 256  }
  0xee   :  { %183 = vsyncadd [#allocation3], 4294967040 }
  0xef   :  { %128 = vsyncpa [#allocation3], 1 }

</bundles_post_ra>
